<compile_context>
chip_gen: v7x
topology: tpu7x:2x2x1
jax: 0.10.0
libtpu: 0.0.40
codegen_flags: <defaults>
</compile_context>

<pallas_src>
import numpy as np

import jax
import jax.numpy as jnp
from jax.experimental import pallas as pl
from jax.experimental.pallas import tpu as pltpu

C_OUT = 32
KH = KW = 3
N_PLANES = 16        # 4x4 stride-2 phase planes of the padded input
N_OFFSETS = 4        # 2x2 pooling-window offsets


def _conv_relu_pool_kernel(xp_ref, w_ref, b_ref, o_ref):
    """One lane-tile per grid step.

    xp_ref: (16, T)    stride-2 phase planes (batch merged into lanes)
    w_ref:  (128, 16)  [pool offset (4) x out channel (32)] x plane weights
    b_ref:  (32, 1)    bias
    o_ref:  (32, T)    pooled / biased / ReLU'd output tile
    """
    # Single MXU matmul: all 4 pooling offsets x 32 channels in one shot.
    y = jnp.dot(w_ref[...], xp_ref[...],
                precision=jax.lax.Precision.HIGHEST,
                preferred_element_type=jnp.float32)            # (128, T)
    pooled = jnp.maximum(jnp.maximum(y[0:32], y[32:64]),
                         jnp.maximum(y[64:96], y[96:128]))      # (32, T)
    # relu(maxpool(conv + b)) == maxpool(relu(conv + b)): ReLU monotone, b per-channel.
    o_ref[...] = jnp.maximum(pooled + b_ref[...], 0.0).astype(o_ref.dtype)


def _round_up(x, m):
    return ((x + m - 1) // m) * m


def alexnet_client_forward(x, w, b, *, block_lanes=None):
    """x: (N, 1, H, W) f32, w: (32, 1, 3, 3) f32, b: (32,) f32 -> (N, 32, H/2, W/2)."""
    N, Cin, H, W = x.shape
    assert Cin == 1 and H % 2 == 0 and W % 2 == 0
    Ho, Wo = H // 2, W // 2
    L = Ho * Wo
    lane_total = N * L

    # --- phase planes: xplanes[r0*4+c0, n*L + i*Wo + j] = xpad[n, r0+2i, c0+2j] ---
    xpad = jnp.pad(x[:, 0].astype(jnp.float32), ((0, 0), (1, 1), (1, 1)))   # (N, H+2, W+2)
    planes = [xpad[:, r0:r0 + 2 * Ho:2, c0:c0 + 2 * Wo:2].reshape(lane_total)
              for r0 in range(4) for c0 in range(4)]
    xplanes = jnp.stack(planes, axis=0)                                     # (16, N*L)

    # --- weights: one (32, 16) zero-scattered matrix per pooling offset -> (128, 16) ---
    sel = np.zeros((N_OFFSETS, KH * KW, N_PLANES), np.float32)
    for p in range(2):
        for q in range(2):
            for dy in range(KH):
                for dx in range(KW):
                    sel[p * 2 + q, dy * KW + dx, (p + dy) * 4 + (q + dx)] = 1.0
    w_taps = w[:, 0].reshape(C_OUT, KH * KW).astype(jnp.float32)            # (32, 9)
    w_all = jnp.einsum('ct,otp->ocp', w_taps, jnp.asarray(sel))             # (4, 32, 16)
    w_all = w_all.reshape(N_OFFSETS * C_OUT, N_PLANES)                      # (128, 16)
    b_k = b.astype(jnp.float32)[:, None]                                    # (32, 1)

    # --- lane blocking: lane-dense tiles (multiple of 128), >=2 steps when possible ---
    MAX_T = 16 * 1024            # ~1 MiB in / 2 MiB out per block (v7x-VMEM safe x2 buffers)
    if block_lanes is not None:
        T = _round_up(max(128, block_lanes), 128)
    elif lane_total <= 256:
        T = _round_up(lane_total, 128)
    elif lane_total <= 2 * MAX_T:
        T = _round_up((lane_total + 1) // 2, 128)      # 2 grid steps (v7x megacore)
    else:
        T = MAX_T
    Lp = _round_up(lane_total, T)
    if Lp != lane_total:
        xplanes = jnp.pad(xplanes, ((0, 0), (0, Lp - lane_total)))

    cost = pl.CostEstimate(
        flops=2 * (N_OFFSETS * C_OUT) * N_PLANES * Lp,
        transcendentals=0,
        bytes_accessed=int(4 * (N_PLANES * Lp + C_OUT * Lp + w_all.size + b_k.size)),
    )
    out_flat = pl.pallas_call(
        _conv_relu_pool_kernel,
        out_shape=jax.ShapeDtypeStruct((C_OUT, Lp), jnp.float32),
        grid=(Lp // T,),
        in_specs=[
            pl.BlockSpec((N_PLANES, T), lambda i: (0, i)),
            pl.BlockSpec((N_OFFSETS * C_OUT, N_PLANES), lambda i: (0, 0)),
            pl.BlockSpec((C_OUT, 1), lambda i: (0, 0)),
        ],
        out_specs=pl.BlockSpec((C_OUT, T), lambda i: (0, i)),
        compiler_params=pltpu.CompilerParams(
            dimension_semantics=("parallel",),
            vmem_limit_bytes=32 * 1024 * 1024,
        ),
        cost_estimate=cost,
    )(xplanes, w_all, b_k)

    # out_flat[c, n*L + i*Wo + j] -> (N, 32, Ho, Wo)
    out = out_flat[:, :lane_total].reshape(C_OUT, N, Ho, Wo)
    return jnp.transpose(out, (1, 0, 2, 3))


def reference_forward(x, w, b):
    """Pure-JAX reference of the PyTorch module (NCHW)."""
    y = jax.lax.conv_general_dilated(
        x, w, window_strides=(1, 1), padding=((1, 1), (1, 1)),
        dimension_numbers=("NCHW", "OIHW", "NCHW"),
        precision=jax.lax.Precision.HIGHEST)
    y = jnp.maximum(y + b[None, :, None, None], 0.0)
    y = jax.lax.reduce_window(
        y, -jnp.inf, jax.lax.max,
        window_dimensions=(1, 1, 2, 2), window_strides=(1, 1, 2, 2), padding="VALID")
    return y


if __name__ == "__main__":
    key = jax.random.PRNGKey(0)
    kx, kw, kb = jax.random.split(key, 3)

    N, H, W = 2, 16, 16
    x = jax.random.normal(kx, (N, 1, H, W), jnp.float32)

    # Deterministic synthetic params (kaiming-normal-like for conv, small bias).
    fan_out = C_OUT * KH * KW
    w = jax.random.normal(kw, (C_OUT, 1, KH, KW), jnp.float32) * (2.0 / fan_out) ** 0.5
    b = jax.random.normal(kb, (C_OUT,), jnp.float32) * 0.01

    out = jax.block_until_ready(alexnet_client_forward(x, w, b))
    ref = reference_forward(x, w, b)

    assert out.shape == (N, C_OUT, H // 2, W // 2), out.shape
    assert jnp.allclose(out, ref, atol=1e-4, rtol=1e-4), float(jnp.max(jnp.abs(out - ref)))
    print("KERNEL_OK")
</pallas_src>

<mosaic_0001>
module attributes {stable_mosaic.version = 11 : i64} {
  func.func @_conv_relu_pool_kernel(%arg0: i32, %arg1: memref<16x128xf32, #tpu.memory_space<vmem>>, %arg2: memref<128x16xf32, #tpu.memory_space<vmem>>, %arg3: memref<32x1xf32, #tpu.memory_space<vmem>>, %arg4: memref<32x128xf32, #tpu.memory_space<vmem>>) attributes {dimension_semantics = [#tpu.dimension_semantics<parallel>], iteration_bounds = array<i64: 1>, scalar_prefetch = 0 : i64, scratch_operands = 0 : i64, tpu.core_type = #tpu.core_type<tc>, window_params = [{transform_indices = @transform_0, window_bounds = array<i64: 16, 128>}, {pipeline_mode = #tpu.pipeline_mode<synchronous>, transform_indices = @transform_1, window_bounds = array<i64: 128, 16>}, {pipeline_mode = #tpu.pipeline_mode<synchronous>, transform_indices = @transform_2, window_bounds = array<i64: 32, 1>}, {transform_indices = @transform_3, window_bounds = array<i64: 32, 128>}]} {
    %c0 = arith.constant 0 : index
    %c0_0 = arith.constant 0 : index
    %0 = vector.load %arg2[%c0, %c0_0] : memref<128x16xf32, #tpu.memory_space<vmem>>, vector<128x16xf32>
    %c0_1 = arith.constant 0 : index
    %c0_2 = arith.constant 0 : index
    %1 = vector.load %arg1[%c0_1, %c0_2] : memref<16x128xf32, #tpu.memory_space<vmem>>, vector<16x128xf32>
    %cst = arith.constant dense<0.000000e+00> : vector<128x128xf32>
    %2 = tpu.matmul %0, %1, %cst {dimension_numbers = #tpu.dot_dimension_numbers<[1], [0], [0], [1], [0, 0, 1, 1], [], []>, precision = #tpu.contract_precision<fp32>} : vector<128x16xf32>, vector<16x128xf32>, vector<128x128xf32> -> vector<128x128xf32>
    %3 = vector.extract_strided_slice %2 {offsets = [0, 0], sizes = [32, 128], strides = [1, 1]} : vector<128x128xf32> to vector<32x128xf32>
    %4 = vector.extract_strided_slice %2 {offsets = [32, 0], sizes = [32, 128], strides = [1, 1]} : vector<128x128xf32> to vector<32x128xf32>
    %5 = arith.maximumf %3, %4 : vector<32x128xf32>
    %6 = vector.extract_strided_slice %2 {offsets = [64, 0], sizes = [32, 128], strides = [1, 1]} : vector<128x128xf32> to vector<32x128xf32>
    %7 = vector.extract_strided_slice %2 {offsets = [96, 0], sizes = [32, 128], strides = [1, 1]} : vector<128x128xf32> to vector<32x128xf32>
    %8 = arith.maximumf %6, %7 : vector<32x128xf32>
    %9 = arith.maximumf %5, %8 : vector<32x128xf32>
    %c0_3 = arith.constant 0 : index
    %c0_4 = arith.constant 0 : index
    %10 = vector.load %arg3[%c0_3, %c0_4] : memref<32x1xf32, #tpu.memory_space<vmem>>, vector<32x1xf32>
    %11 = vector.broadcast %10 : vector<32x1xf32> to vector<32x128xf32>
    %12 = arith.addf %9, %11 : vector<32x128xf32>
    %cst_5 = arith.constant 0.000000e+00 : f32
    %13 = vector.broadcast %cst_5 : f32 to vector<32x128xf32>
    %14 = arith.maximumf %12, %13 : vector<32x128xf32>
    %c0_6 = arith.constant 0 : index
    %c0_7 = arith.constant 0 : index
    %15 = vector.load %arg4[%c0_6, %c0_7] : memref<32x128xf32, #tpu.memory_space<vmem>>, vector<32x128xf32>
    tpu.vector_store %arg4[%c0_6, %c0_7], %14 {strides = array<i32>} : memref<32x128xf32, #tpu.memory_space<vmem>>, vector<32x128xf32>,
    return
  }
  func.func @transform_0(%arg0: i32) -> (i32, i32) {
    %c0_i32 = arith.constant 0 : i32
    %c0_i32_0 = arith.constant 0 : i32
    return %c0_i32, %arg0 : i32, i32
  }
  func.func @transform_1(%arg0: i32) -> (i32, i32) {
    %c0_i32 = arith.constant 0 : i32
    %c0_i32_0 = arith.constant 0 : i32
    %c0_i32_1 = arith.constant 0 : i32
    return %c0_i32, %c0_i32_0 : i32, i32
  }
  func.func @transform_2(%arg0: i32) -> (i32, i32) {
    %c0_i32 = arith.constant 0 : i32
    %c0_i32_0 = arith.constant 0 : i32
    %c0_i32_1 = arith.constant 0 : i32
    return %c0_i32, %c0_i32_0 : i32, i32
  }
  func.func @transform_3(%arg0: i32) -> (i32, i32) {
    %c0_i32 = arith.constant 0 : i32
    %c0_i32_0 = arith.constant 0 : i32
    return %c0_i32, %arg0 : i32, i32
  }
}

</mosaic_0001>

<bundles_post_ra>
// kernel: tpu_custom_call.1
= control target key start
LH: loop header
LB: loop body
LE: loop exit
PB: predicated region body
PF: predicated region fallthrough
CT: control target
= control target key end

     0   :  { %vm33_vm0 = vcmask 130048   ;;  %v1660_v9 = vmov 0   ;;  %s1972_s0 = inlined_call_operand.vmem [shape: f32[16,128], index: 0, kind: input, shape index: {}]   ;;  %s1973_s1 = inlined_call_operand.vmem [shape: f32[128,16], index: 1, kind: input, shape index: {}]   ;;  %s1974_s2 = inlined_call_operand.vmem [shape: f32[32,1], index: 2, kind: input, shape index: {}]   ;;  %s1975_s3 = inlined_call_operand.hbm [shape: f32[32,128], index: 3, kind: output, shape index: {}]  }
   0x1   :  { %v31_v0 = vld [vmem:[%s1972_s0] sm:$0xff]  ;;  %v32_v1 = vld [vmem:[%s1972_s0 + $0x8] sm:$0xff]  ;;  %v17_v7 = vld [vmem:[%s1973_s1 + $0x10] sm:$0xff]  ;;  %1634 = vset.pattern.permute.xlu0 %v1660_v9  ;;  %1635 = vset.pattern.permute.xlu1 %v1660_v9 }
   0x2   :  { %v15_v2 = vld [vmem:[%s1973_s1] sm:$0xff]  ;;  %v83_v3 = vand.u32 4294901760, %v31_v0  ;;  %v86_v4 = vand.u32 4294901760, %v32_v1  ;;  %v16_v6 = vld [vmem:[%s1973_s1 + $0x8] sm:$0xff]  ;;  %v18_v8 = vld [vmem:[%s1973_s1 + $0x18] sm:$0xff]  ;;  %v41_v12 = vsel %vm33_vm0, %v17_v7, 0 }
   0x3   :  { %v35_v5 = vsel %vm33_vm0, %v15_v2, 0  ;;  %v38_v11 = vsel %vm33_vm0, %v16_v6, 0  ;;  %v44_v13 = vsel %vm33_vm0, %v18_v8, 0  ;;  %v19_v14 = vld [vmem:[%s1973_s1 + $0x20] sm:$0xff]  ;;  %v1715_v17 = vand.u32 4294901760, %v41_v12  ;;  %v20_v19 = vld [vmem:[%s1973_s1 + $0x28] sm:$0xff] }
   0x4   :  { %v1703_v10 = vand.u32 4294901760, %v35_v5  ;;  %v1711_v15 = vpack.c.bf16 %v86_v4, %v83_v3  ;;  %v1713_v16 = vand.u32 4294901760, %v38_v11  ;;  %v1717_v18 = vsub.f32 %v31_v0, %v83_v3  ;;  %v1198_v32 = vld [vmem:[%s1974_s2] sm:$0xff]  ;;  %v1200_v33 = vld [vmem:[%s1974_s2 + $0x10] sm:$0xff] }
   0x5   :  { %v1725_v21 = vsub.f32 %v32_v1, %v86_v4  ;;  %v1727_v22 = vand.u32 4294901760, %v44_v13  ;;  %v47_v23 = vsel %vm33_vm0, %v19_v14, 0  ;;  %v1736_v25 = vsub.f32 %v41_v12, %v1715_v17  ;;  %1204 = vperm.xlu0 %1634, %v1198_v32   ;;  %1214 = vperm.xlu1 %1635, %v1200_v33  }
   0x6   :  { %v1723_v20 = vsub.f32 %v35_v5, %v1703_v10  ;;  %1539 = vmatprep.subr.bf16.mxu0 %v1711_v15  ;;  %1527 = vmatprep.subr.bf16.mxu1 %v1711_v15  ;;  %v1733_v24 = vsub.f32 %v38_v11, %v1713_v16  ;;  %v312_v26 = vand.u32 4294901760, %v1717_v18  ;;  %v1739_v27 = vand.u32 4294901760, %v47_v23 }
   0x7   :  { %1541 = vmatpush3.bf16.msra.mxu0 %v1711_v15  ;;  %1529 = vmatpush3.bf16.msra.mxu1 %v1711_v15  ;;  %v319_v29 = vand.u32 4294901760, %v1725_v21  ;;  %v1746_v30 = vsub.f32 %v44_v13, %v1727_v22  ;;  %v50_v31 = vsel %vm33_vm0, %v20_v19, 0  ;;  %v171_v35 = vand.u32 4294901760, %v1736_v25 }
   0x8   :  { %v151_v28 = vand.u32 4294901760, %v1723_v20  ;;  %v161_v34 = vand.u32 4294901760, %v1733_v24  ;;  %v313_v36 = vsub.f32 %v1717_v18, %v312_v26  ;;  %v1759_v37 = vsub.f32 %v47_v23, %v1739_v27 }
   0x9   :  { %8 = vsyncpa [#allocation3], 0  ;;  %v320_v39 = vsub.f32 %v1725_v21, %v319_v29  ;;  %v181_v40 = vand.u32 4294901760, %v1746_v30  ;;  %v1542_v41 = vpack.c.bf16 %v319_v29, %v312_v26  ;;  %v21_v42 = vld [vmem:[%s1973_s1 + $0x30] sm:$0xff]  ;;  %v1199_v43 = vld [vmem:[%s1974_s2 + $0x8] sm:$0xff]  ;;  %v172_v46 = vsub.f32 %v1736_v25, %v171_v35 }
   0xa   :  { %1446 = vmatprep.mubr.f32.mxu0 %v151_v28  ;;  %v152_v38 = vsub.f32 %v1723_v20, %v151_v28  ;;  %v162_v44 = vsub.f32 %v1733_v24, %v161_v34  ;;  %v314_v45 = vand.u32 4294901760, %v313_v36  ;;  %v191_v47 = vand.u32 4294901760, %v1759_v37  ;;  %v22_v52 = vld [vmem:[%s1973_s1 + $0x38] sm:$0xff]  ;;  %v23_v53 = vld [vmem:[%s1973_s1 + $0x40] sm:$0xff]  ;;  %v24_v54 = vld [vmem:[%s1973_s1 + $0x48] sm:$0xff]  ;;  %1209 = vperm.xlu0 %1634, %v1199_v43  }
   0xb   :  { %1447 = vmatmul.mubr.f32.vlgmr.msra.gmra.mrb[0].mxu0 %v161_v34  ;;  %v321_v49 = vand.u32 4294901760, %v320_v39  ;;  %1543 = vmatprep.subr.bf16.mxu0 %v1542_v41  ;;  %v182_v50 = vsub.f32 %v1746_v30, %v181_v40  ;;  %v1774_v51 = vand.u32 4294901760, %v50_v31  ;;  %v173_v56 = vand.u32 4294901760, %v172_v46  ;;  %v25_v63 = vld [vmem:[%s1973_s1 + $0x50] sm:$0xff]  ;;  %v26_v0 = vld [vmem:[%s1973_s1 + $0x58] sm:$0xff]  ;;  %v27_v1 = vld [vmem:[%s1973_s1 + $0x60] sm:$0xff] }
   0xc   :  { %v153_v48 = vand.u32 4294901760, %v152_v38  ;;  %1449 = vmatprep.mubr.f32.mxu0 %v171_v35  ;;  %v163_v55 = vand.u32 4294901760, %v162_v44  ;;  %1545 = vmatpush3.bf16.msra.mxu0 %v1542_v41  ;;  %v192_v57 = vsub.f32 %v1759_v37, %v191_v47  ;;  %v53_v58 = vsel %vm33_vm0, %v21_v42, 0  ;;  %v1201_v6 = vld [vmem:[%s1974_s2 + $0x18] sm:$0xff]  ;;  %v28_v35 = vld [vmem:[%s1973_s1 + $0x68] sm:$0xff] }
   0xd   :  { %v1530_v59 = vpack.c.bf16 %v321_v49, %v314_v45  ;;  %v183_v60 = vand.u32 4294901760, %v182_v50  ;;  %v1788_v61 = vsub.f32 %v50_v31, %v1774_v51  ;;  %v1790_v62 = vand.u32 4294901760, %v53_v58  ;;  %1547 = vmatprep.subr.bf16.mxu0 %v1711_v15  ;;  %1219 = vperm.xlu1 %1635, %v1201_v6   ;;  %v29_v45 = vld [vmem:[%s1973_s1 + $0x70] sm:$0xff] }
   0xe   :  { %1362 = vmatprep.mubr.f32.mxu1 %v153_v48  ;;  %v193_v2 = vand.u32 4294901760, %v192_v57  ;;  %v56_v3 = vsel %vm33_vm0, %v22_v52, 0  ;;  %v59_v4 = vsel %vm33_vm0, %v23_v53, 0  ;;  %v62_v5 = vsel %vm33_vm0, %v24_v54, 0 }
   0xf   :  { %1363 = vmatmul.mubr.f32.vlgmr.msra.gmra.mrb[0].mxu1 %v163_v55  ;;  %1450 = vmatmul.mubr.f32.gmra.mrb[2].mxu0 %v181_v40  ;;  %v201_v7 = vand.u32 4294901760, %v1788_v61  ;;  %v1810_v8 = vsub.f32 %v53_v58, %v1790_v62  ;;  %v1812_v9 = vand.u32 4294901760, %v56_v3  ;;  %v1814_v11 = vand.u32 4294901760, %v59_v4  ;;  %v30_v55 = vld [vmem:[%s1973_s1 + $0x78] sm:$0xff]  ;;  %s1661_s1 = smov [#allocation2]  }
  0x10   :  { %1531 = vmatprep.subr.bf16.mxu1 %v1530_v59  ;;  %1365 = vmatprep.mubr.f32.mxu1 %v173_v56  ;;  %v1816_v12 = vand.u32 4294901760, %v62_v5  ;;  %v65_v13 = vsel %vm33_vm0, %v25_v63, 0  ;;  %v68_v14 = vsel %vm33_vm0, %v26_v0, 0  ;;  %v71_v19 = vsel %vm33_vm0, %v27_v1, 0  ;;  %s1239_s26 = sshll.u32 %s1661_s1, 4  ;;  %s1240_s26 = int_to_ptr.vmem [resolvable:$true] %s1239_s26 }
  0x11   :  { %1533 = vmatpush3.bf16.msra.mxu1 %v1530_v59  ;;  %1452 = vmatprep.mubr.f32.mxu0 %v191_v47  ;;  %v211_v23 = vand.u32 4294901760, %v1810_v8  ;;  %v202_v26 = vsub.f32 %v1788_v61, %v201_v7  ;;  %v1824_v28 = vsub.f32 %v56_v3, %v1812_v9  ;;  %v1827_v29 = vsub.f32 %v59_v4, %v1814_v11  ;;  %s1636_s27 = scalar_lea.vmem %s1240_s26, 512  ;;  %p1641_p1 = scmp.lt.s32.totalorder %s1240_s26, %s1240_s26 }
  0x12   :  { %v1830_v31 = vsub.f32 %v62_v5, %v1816_v12  ;;  %v1832_v32 = vand.u32 4294901760, %v65_v13  ;;  %v1834_v33 = vand.u32 4294901760, %v68_v14  ;;  %v1836_v34 = vand.u32 4294901760, %v71_v19  ;;  %p1637_p0 = scmp.ne.s32.totalorder %s1240_s26, %s1636_s27  ;;  %p1642_p2 = scmp.lt.s32.totalorder %s1636_s27, %s1636_s27 }
  0x13   :  { %1366 = vmatmul.mubr.f32.gmra.mrb[2].mxu1 %v183_v60  ;;  %1453 = vmatmul.mubr.f32.gmra.mrb[4].mxu0 %v201_v7  ;;  %v203_v36 = vand.u32 4294901760, %v202_v26  ;;  %v221_v38 = vand.u32 4294901760, %v1824_v28  ;;  %v212_v39 = vsub.f32 %v1810_v8, %v211_v23  ;;  %v231_v40 = vand.u32 4294901760, %v1827_v29 }
  0x14   :  { %1368 = vmatprep.mubr.f32.mxu1 %v193_v2  ;;  %1455 = vmatprep.mubr.f32.mxu0 %v211_v23  ;;  %v241_v41 = vand.u32 4294901760, %v1830_v31  ;;  %v1846_v42 = vsub.f32 %v65_v13, %v1832_v32  ;;  %v1849_v43 = vsub.f32 %v68_v14, %v1834_v33  ;;  %v1852_v44 = vsub.f32 %v71_v19, %v1836_v34  ;;  %p1643_p3 = por %p1642_p2, %p1641_p1 }
  0x15   :  { %v213_v46 = vand.u32 4294901760, %v212_v39  ;;  %v222_v47 = vsub.f32 %v1824_v28, %v221_v38  ;;  %v232_v48 = vsub.f32 %v1827_v29, %v231_v40  ;;  %v74_v49 = vsel %vm33_vm0, %v28_v35, 0 }
  0x16   :  { %v251_v50 = vand.u32 4294901760, %v1846_v42  ;;  %v242_v52 = vsub.f32 %v1830_v31, %v241_v41  ;;  %v261_v53 = vand.u32 4294901760, %v1849_v43  ;;  %v271_v54 = vand.u32 4294901760, %v1852_v44  ;;  %p1644_p4 = pnand %p1643_p3, %p1637_p0 }
  0x17   :  { %1369 = vmatmul.mubr.f32.gmra.mrb[4].mxu1 %v203_v36  ;;  %1456 = vmatmul.mubr.f32.gmra.mrb[6].mxu0 %v221_v38  ;;  %v223_v56 = vand.u32 4294901760, %v222_v47  ;;  %v233_v57 = vand.u32 4294901760, %v232_v48  ;;  %v1867_v58 = vand.u32 4294901760, %v74_v49  ;;  %v77_v59 = vsel %vm33_vm0, %v29_v45, 0 }
  0x18   :  { %1371 = vmatprep.mubr.f32.mxu1 %v213_v46  ;;  %1458 = vmatprep.mubr.f32.mxu0 %v231_v40  ;;  %v252_v60 = vsub.f32 %v1846_v42, %v251_v50  ;;  %v1874_v0 = vand.u32 4294901760, %v77_v59  ;;  %v80_v1 = vsel %vm33_vm0, %v30_v55, 0  ;;  %v1534_v2 = vpack.c.bf16 %v1725_v21, %v1717_v18 }
  0x19   :  { %v1872_v63 = vsub.f32 %v74_v49, %v1867_v58  ;;  %v243_v3 = vand.u32 4294901760, %v242_v52  ;;  %v262_v4 = vsub.f32 %v1849_v43, %v261_v53  ;;  %v1880_v5 = vand.u32 4294901760, %v80_v1 }
  0x1a   :  { %v253_v6 = vand.u32 4294901760, %v252_v60  ;;  %v272_v13 = vsub.f32 %v1852_v44, %v271_v54  ;;  %v1885_v14 = vsub.f32 %v77_v59, %v1874_v0  ;;  %1535 = vmatprep.subr.bf16.mxu1 %v1534_v2 }
  0x1b   :  { %1372 = vmatmul.mubr.f32.gmra.mrb[6].mxu1 %v223_v56  ;;  %1459 = vmatmul.mubr.f32.gmra.mrb[8].mxu0 %v241_v41  ;;  %v281_v7 = vand.u32 4294901760, %v1872_v63  ;;  %v1888_v19 = vsub.f32 %v80_v1, %v1880_v5  ;;  %v263_v21 = vand.u32 4294901760, %v262_v4 }
  0x1c   :  { %1374 = vmatprep.mubr.f32.mxu1 %v233_v57  ;;  %1461 = vmatprep.mubr.f32.mxu0 %v251_v50  ;;  %v291_v18 = vand.u32 4294901760, %v1885_v14  ;;  %v273_v35 = vand.u32 4294901760, %v272_v13 }
  0x1d   :  { %v282_v23 = vsub.f32 %v1872_v63, %v281_v7  ;;  %v301_v26 = vand.u32 4294901760, %v1888_v19 }
  0x1e   :  { %v292_v36 = vsub.f32 %v1885_v14, %v291_v18 }
  0x1f   :  { %1375 = vmatmul.mubr.f32.gmra.mrb[8].mxu1 %v243_v3  ;;  %1462 = vmatmul.mubr.f32.gmra.mrb[10].mxu0 %v261_v53  ;;  %v283_v38 = vand.u32 4294901760, %v282_v23  ;;  %v302_v39 = vsub.f32 %v1888_v19, %v301_v26 }
  0x20   :  { %1377 = vmatprep.mubr.f32.mxu1 %v253_v6  ;;  %1464 = vmatprep.mubr.f32.mxu0 %v271_v54  ;;  %v293_v40 = vand.u32 4294901760, %v292_v36 }
  0x21   :  { %v303_v41 = vand.u32 4294901760, %v302_v39 }
  0x23   :  { %1378 = vmatmul.mubr.f32.gmra.mrb[10].mxu1 %v263_v21  ;;  %1465 = vmatmul.mubr.f32.gmra.mrb[12].mxu0 %v281_v7 }
  0x24   :  { %1380 = vmatprep.mubr.f32.mxu1 %v273_v35  ;;  %1467 = vmatprep.mubr.f32.mxu0 %v291_v18 }
  0x27   :  { %1381 = vmatmul.mubr.f32.gmra.mrb[12].mxu1 %v283_v38  ;;  %1468 = vmatmul.mubr.f32.gmra.mrb[14].mxu0 %v301_v26 }
  0x28   :  { %1383 = vmatprep.mubr.f32.mxu1 %v293_v40  ;;  %1474 = vmatprep.mubr.f32.mxu0 %v1703_v10 }
  0x2b   :  { %1384 = vmatmul.mubr.f32.gmra.mrb[14].mxu1 %v303_v41  ;;  %1475 = vmatmul.mubr.f32.vlgmr.msra.gmra.mrb[0].mxu0 %v1713_v16 }
  0x2c   :  { %1390 = vmatprep.mubr.f32.mxu1 %v1703_v10  ;;  %1477 = vmatprep.mubr.f32.mxu0 %v1715_v17 }
  0x2d   :  { %1549 = vmatpush3.bf16.msra.mxu0 %v1711_v15 }
  0x2f   :  { %1391 = vmatmul.mubr.f32.vlgmr.msra.gmra.mrb[0].mxu1 %v1713_v16  ;;  %1478 = vmatmul.mubr.f32.gmra.mrb[2].mxu0 %v1727_v22 }
  0x30   :  { %1537 = vmatpush3.bf16.msra.mxu1 %v1534_v2  ;;  %1393 = vmatprep.mubr.f32.mxu1 %v1715_v17 }
  0x31   :  { %1480 = vmatprep.mubr.f32.mxu0 %v1739_v27 }
  0x33   :  { %1394 = vmatmul.mubr.f32.gmra.mrb[2].mxu1 %v1727_v22  ;;  %1481 = vmatmul.mubr.f32.gmra.mrb[4].mxu0 %v1774_v51 }
  0x34   :  { %1396 = vmatprep.mubr.f32.mxu1 %v1739_v27  ;;  %1483 = vmatprep.mubr.f32.mxu0 %v1790_v62 }
  0x37   :  { %1397 = vmatmul.mubr.f32.gmra.mrb[4].mxu1 %v1774_v51  ;;  %1484 = vmatmul.mubr.f32.gmra.mrb[6].mxu0 %v1812_v9 }
  0x38   :  { %1399 = vmatprep.mubr.f32.mxu1 %v1790_v62  ;;  %1486 = vmatprep.mubr.f32.mxu0 %v1814_v11 }
  0x3b   :  { %1400 = vmatmul.mubr.f32.gmra.mrb[6].mxu1 %v1812_v9  ;;  %1487 = vmatmul.mubr.f32.gmra.mrb[8].mxu0 %v1816_v12 }
  0x3c   :  { %1402 = vmatprep.mubr.f32.mxu1 %v1814_v11  ;;  %1489 = vmatprep.mubr.f32.mxu0 %v1832_v32 }
  0x3f   :  { %1403 = vmatmul.mubr.f32.gmra.mrb[8].mxu1 %v1816_v12  ;;  %1490 = vmatmul.mubr.f32.gmra.mrb[10].mxu0 %v1834_v33 }
  0x40   :  { %1405 = vmatprep.mubr.f32.mxu1 %v1832_v32  ;;  %1492 = vmatprep.mubr.f32.mxu0 %v1836_v34 }
  0x43   :  { %1406 = vmatmul.mubr.f32.gmra.mrb[10].mxu1 %v1834_v33  ;;  %1493 = vmatmul.mubr.f32.gmra.mrb[12].mxu0 %v1867_v58 }
  0x44   :  { %1408 = vmatprep.mubr.f32.mxu1 %v1836_v34  ;;  %1495 = vmatprep.mubr.f32.mxu0 %v1874_v0 }
  0x47   :  { %1409 = vmatmul.mubr.f32.gmra.mrb[12].mxu1 %v1867_v58  ;;  %1496 = vmatmul.mubr.f32.gmra.mrb[14].mxu0 %v1880_v5 }
  0x48   :  { %1411 = vmatprep.mubr.f32.mxu1 %v1874_v0  ;;  %1502 = vmatprep.mubr.f32.mxu0 %v1703_v10 }
  0x4b   :  { %1412 = vmatmul.mubr.f32.gmra.mrb[14].mxu1 %v1880_v5  ;;  %1503 = vmatmul.mubr.f32.vlgmr.msra.gmra.mrb[0].mxu0 %v1713_v16 }
  0x4c   :  { %1418 = vmatprep.mubr.f32.mxu1 %v1723_v20  ;;  %1505 = vmatprep.mubr.f32.mxu0 %v1715_v17 }
  0x4f   :  { %1419 = vmatmul.mubr.f32.vlgmr.msra.gmra.mrb[0].mxu1 %v1733_v24  ;;  %1506 = vmatmul.mubr.f32.gmra.mrb[2].mxu0 %v1727_v22 }
  0x50   :  { %1421 = vmatprep.mubr.f32.mxu1 %v1736_v25  ;;  %1508 = vmatprep.mubr.f32.mxu0 %v1739_v27 }
  0x53   :  { %1422 = vmatmul.mubr.f32.gmra.mrb[2].mxu1 %v1746_v30  ;;  %1509 = vmatmul.mubr.f32.gmra.mrb[4].mxu0 %v1774_v51 }
  0x54   :  { %1424 = vmatprep.mubr.f32.mxu1 %v1759_v37  ;;  %1511 = vmatprep.mubr.f32.mxu0 %v1790_v62 }
  0x57   :  { %1425 = vmatmul.mubr.f32.gmra.mrb[4].mxu1 %v1788_v61  ;;  %1512 = vmatmul.mubr.f32.gmra.mrb[6].mxu0 %v1812_v9 }
  0x58   :  { %1427 = vmatprep.mubr.f32.mxu1 %v1810_v8  ;;  %1514 = vmatprep.mubr.f32.mxu0 %v1814_v11 }
  0x5b   :  { %1428 = vmatmul.mubr.f32.gmra.mrb[6].mxu1 %v1824_v28  ;;  %1515 = vmatmul.mubr.f32.gmra.mrb[8].mxu0 %v1816_v12 }
  0x5c   :  { %1430 = vmatprep.mubr.f32.mxu1 %v1827_v29  ;;  %1517 = vmatprep.mubr.f32.mxu0 %v1832_v32 }
  0x5f   :  { %1431 = vmatmul.mubr.f32.gmra.mrb[8].mxu1 %v1830_v31  ;;  %1518 = vmatmul.mubr.f32.gmra.mrb[10].mxu0 %v1834_v33 }
  0x60   :  { %1433 = vmatprep.mubr.f32.mxu1 %v1846_v42  ;;  %1520 = vmatprep.mubr.f32.mxu0 %v1836_v34 }
  0x63   :  { %1434 = vmatmul.mubr.f32.gmra.mrb[10].mxu1 %v1849_v43  ;;  %1521 = vmatmul.mubr.f32.gmra.mrb[12].mxu0 %v1867_v58 }
  0x64   :  { %1436 = vmatprep.mubr.f32.mxu1 %v1852_v44  ;;  %1523 = vmatprep.mubr.f32.mxu0 %v1874_v0 }
  0x67   :  { %1437 = vmatmul.mubr.f32.gmra.mrb[12].mxu1 %v1872_v63  ;;  %1524 = vmatmul.mubr.f32.gmra.mrb[14].mxu0 %v1880_v5 }
  0x68   :  { %1439 = vmatprep.mubr.f32.mxu1 %v1885_v14 }
  0x6b   :  { %1440 = vmatmul.mubr.f32.gmra.mrb[14].mxu1 %v1888_v19 }
  0x84   :  { %v1205_v63 = vpop.permute.xlu0 %1204  ;;  %v1215_v7 = vpop.permute.xlu1 %1214 }
  0x89   :  { %v1210_v19 = vpop.permute.xlu0 %1209 }
 0x11e   :  { %v1504_v10 = vpop.f32.mrb[0].mxu0 }
 0x11f   :  { %v1092_v15 = vpop.f32.mrb[1].mxu0 }
 0x122   :  { %v1420_v16 = vpop.f32.mrb[0].mxu1  ;;  %v1507_v17 = vpop.f32.mrb[2].mxu0 }
 0x123   :  { %v1550_v20 = vadd.f32 %v1504_v10, %v1420_v16  ;;  %v552_v22 = vpop.f32.mrb[1].mxu1  ;;  %v1104_v24 = vpop.f32.mrb[3].mxu0 }
 0x124   :  { %v1551_v25 = vadd.f32 %v1092_v15, %v552_v22 }
 0x126   :  { %v1423_v27 = vpop.f32.mrb[2].mxu1  ;;  %v1510_v30 = vpop.f32.mrb[4].mxu0 }
 0x127   :  { %v1552_v37 = vadd.f32 %v1507_v17, %v1423_v27  ;;  %v566_v51 = vpop.f32.mrb[3].mxu1  ;;  %v1116_v61 = vpop.f32.mrb[5].mxu0 }
 0x128   :  { %v1553_v62 = vadd.f32 %v1104_v24, %v566_v51  ;;  %v1220_v17 = vpop.permute.xlu1 %1219 }
 0x12a   :  { %v1426_v8 = vpop.f32.mrb[4].mxu1  ;;  %v1513_v9 = vpop.f32.mrb[6].mxu0 }
 0x12b   :  { %v1554_v11 = vadd.f32 %v1510_v30, %v1426_v8  ;;  %v580_v12 = vpop.f32.mrb[5].mxu1  ;;  %v1128_v28 = vpop.f32.mrb[7].mxu0 }
 0x12c   :  { %v1555_v29 = vadd.f32 %v1116_v61, %v580_v12 }
 0x12d   :  { %v1187_v31 = vmax.f32 %v1550_v20, %v1554_v11 }
 0x12e   :  { %v1186_v32 = vmax.f32 %v1551_v25, %v1555_v29  ;;  %v1429_v33 = vpop.f32.mrb[6].mxu1  ;;  %v1516_v34 = vpop.f32.mrb[8].mxu0 }
 0x12f   :  { %v1556_v42 = vadd.f32 %v1513_v9, %v1429_v33  ;;  %v594_v43 = vpop.f32.mrb[7].mxu1  ;;  %v1140_v44 = vpop.f32.mrb[9].mxu0 }
 0x130   :  { %v1557_v45 = vadd.f32 %v1128_v28, %v594_v43 }
 0x131   :  { %v1189_v46 = vmax.f32 %v1552_v37, %v1556_v42 }
 0x132   :  { %v1188_v47 = vmax.f32 %v1553_v62, %v1557_v45  ;;  %v1432_v48 = vpop.f32.mrb[8].mxu1  ;;  %v1519_v49 = vpop.f32.mrb[10].mxu0 }
 0x133   :  { %v1558_v50 = vadd.f32 %v1516_v34, %v1432_v48  ;;  %v608_v52 = vpop.f32.mrb[9].mxu1  ;;  %v1152_v53 = vpop.f32.mrb[11].mxu0 }
 0x134   :  { %v1559_v54 = vadd.f32 %v1140_v44, %v608_v52 }
 0x136   :  { %v1435_v55 = vpop.f32.mrb[10].mxu1  ;;  %v1522_v56 = vpop.f32.mrb[12].mxu0 }
 0x137   :  { %v1560_v57 = vadd.f32 %v1519_v49, %v1435_v55  ;;  %v622_v58 = vpop.f32.mrb[11].mxu1  ;;  %v1164_v59 = vpop.f32.mrb[13].mxu0 }
 0x138   :  { %v1561_v60 = vadd.f32 %v1152_v53, %v622_v58 }
 0x13a   :  { %v1438_v0 = vpop.f32.mrb[12].mxu1  ;;  %v1525_v1 = vpop.f32.mrb[14].mxu0 }
 0x13b   :  { %v1562_v2 = vadd.f32 %v1522_v56, %v1438_v0  ;;  %v636_v3 = vpop.f32.mrb[13].mxu1  ;;  %v1176_v4 = vpop.f32.mrb[15].mxu0 }
 0x13c   :  { %v1563_v5 = vadd.f32 %v1164_v59, %v636_v3 }
 0x13d   :  { %v1191_v6 = vmax.f32 %v1558_v50, %v1562_v2 }
 0x13e   :  { %v1190_v13 = vmax.f32 %v1559_v54, %v1563_v5  ;;  %v1441_v14 = vpop.f32.mrb[14].mxu1 }
 0x13f   :  { %v1564_v18 = vadd.f32 %v1525_v1, %v1441_v14  ;;  %v650_v21 = vpop.f32.mrb[15].mxu1  ;;  %v1195_v23 = vmax.f32 %v1187_v31, %v1191_v6 }
 0x140   :  { %v1194_v26 = vmax.f32 %v1186_v32, %v1190_v13  ;;  %v1565_v35 = vadd.f32 %v1176_v4, %v650_v21 }
 0x141   :  { %v1193_v36 = vmax.f32 %v1560_v57, %v1564_v18  ;;  %v1223_v38 = vadd.f32 %v1210_v19, %v1195_v23 }
 0x142   :  { %v1222_v39 = vadd.f32 %v1205_v63, %v1194_v26  ;;  %v1192_v40 = vmax.f32 %v1561_v60, %v1565_v35 }
 0x143   :  { %v1227_v41 = vmax.f32 %v1223_v38, 0.0  ;;  %v1197_v10 = vmax.f32 %v1189_v46, %v1193_v36 }
 0x144   :  { %v1226_v15 = vmax.f32 %v1222_v39, 0.0  ;;  %v1196_v16 = vmax.f32 %v1188_v47, %v1192_v40 }
 0x145   :  { %1231 = vst [vmem:[#allocation2 + $0x8] sm:$0xff] %v1227_v41  ;;  %v1225_v20 = vadd.f32 %v1220_v17, %v1197_v10 }
 0x146   :  { %1230 = vst [vmem:[#allocation2] sm:$0xff] %v1226_v15  ;;  %v1224_v22 = vadd.f32 %v1215_v7, %v1196_v16 }
 0x147   :  { %v1229_v24 = vmax.f32 %v1225_v20, 0.0 }
 0x148   :  { %v1228_v25 = vmax.f32 %v1224_v22, 0.0 }
 0x149   :  { %1233 = vst [vmem:[#allocation2 + $0x18] sm:$0xff] %v1229_v24 }
 0x14a   :  { %1232 = vst [vmem:[#allocation2 + $0x10] sm:$0xff] %v1228_v25 }
 0x14b   :  { %1647 = shalt.err (!%p1644_p4)
}
 0x14c   :  { %s1648_s30 = scalar_lea.hbm %s1975_s3, 512 }
 0x14d   :  { %p1649_p5 = scmp.ne.s32.totalorder %s1975_s3, %s1648_s30  ;;  %p1652_p6 = scmp.lt.u32.totalorder %s1648_s30, %s1975_s3 }
 0x14f   :  { %p1654_p7 = pnand %p1652_p6, %p1649_p5 }
 0x151   :  { %1657 = shalt.err (!%p1654_p7)
}
 0x152   :  { %s1662_s8 = smov 128   ;;  %s1663_s9 = smov 8  }
 0x153   :  { %1245 = dma.vmem_to_hbm [thread:$0]  %s1240_s26, 512, %s1975_s3, [#allocation3], %s1662_s8, %s1662_s8, %s1663_s9  }
 0x154   :  { %1658 = dma.done.wait [#allocation3], 512  }
 0x155   :  { %1659 = vsyncadd [#allocation3], 4294966784 }
 0x156   :  { %1249 = vsyncpa [#allocation3], 1 }

</bundles_post_ra>
